<compile_context>
chip_gen: v6e
topology: v6e:2x2x1
jax: 0.10.0
libtpu: 0.0.40
codegen_flags: <defaults>
</compile_context>

<pallas_src>
import math
import numpy as np
import jax
import jax.numpy as jnp
from jax.experimental import pallas as pl
from jax.experimental.pallas import tpu as pltpu


_LANE = 128
_MAX_TILE_B = 4096   # caps the lane-sparse (TILE_B, 1) t buffers in VMEM


def _round_up(x, m):
    return ((x + m - 1) // m) * m


def _time_embedding_kernel(t_ref, freqs2_ref, phase_ref,
                           w1t_ref, b1_ref, w2t_ref, b2_ref, out_ref):
    # t_ref:      (TILE_B, 1)   f32   timesteps
    # freqs2_ref: (1, 2*half)   f32   [f, f]         duplicated frequency table
    # phase_ref:  (1, 2*half)   f32   [0.., pi/2..]  sin/cos phase offsets
    # w1t_ref:    (2*half, HP)  bf16  Linear1 weight, pre-transposed, lane-padded
    # b1_ref:     (1, HP)       f32
    # w2t_ref:    (HP, HP)      bf16  Linear2 weight, pre-transposed, lane-padded
    # b2_ref:     (1, HP)       f32
    # out_ref:    (TILE_B, HP)  f32   HP % 128 == 0 -> lane-dense, unmasked stores
    t = t_ref[...]                                                  # (TILE_B, 1)
    # cos(x) == sin(x + pi/2): one EUP sin pass, no lane concat / XLU shuffle.
    sincos = jnp.sin(t * freqs2_ref[...] + phase_ref[...])          # (TILE_B, 2*half) f32

    h = jnp.dot(sincos.astype(w1t_ref.dtype), w1t_ref[...],
                preferred_element_type=jnp.float32) + b1_ref[...]
    h = jnp.maximum(h, 0.0)                                         # ReLU

    out = jnp.dot(h.astype(w2t_ref.dtype), w2t_ref[...],
                  preferred_element_type=jnp.float32) + b2_ref[...]
    out_ref[...] = out.astype(out_ref.dtype)


def _xavier_uniform(key, shape):
    # shape = (fan_out, fan_in) like torch.nn.Linear.weight
    fan_out, fan_in = shape
    bound = math.sqrt(6.0 / (fan_in + fan_out))
    return jax.random.uniform(key, shape, jnp.float32, minval=-bound, maxval=bound)


def make_time_embedding_params(key, dim_hidden, dim_time_emb):
    """Raw torch-layout parameters (weight = (out, in), zero biases)."""
    k1, k2 = jax.random.split(key)
    w1 = _xavier_uniform(k1, (dim_hidden, dim_time_emb))
    b1 = jnp.zeros((dim_hidden,), jnp.float32)
    w2 = _xavier_uniform(k2, (dim_hidden, dim_hidden))
    b2 = jnp.zeros((dim_hidden,), jnp.float32)
    return {"w1": w1, "b1": b1, "w2": w2, "b2": b2}


def prepare_time_embedding_params(params, dim_time_emb, matmul_dtype=jnp.bfloat16):
    """One-time prep: bake freq/phase tables, transpose + lane-pad + bf16-cast weights."""
    # TODO(synk): odd dim_time_emb (reference zero-pads the last sinusoid column)
    # is not supported; even dims >= 4 asserted (half == 1 divides by zero).
    assert dim_time_emb % 2 == 0 and dim_time_emb >= 4
    half = dim_time_emb // 2
    H = params["w1"].shape[0]
    HP = _round_up(H, _LANE)          # lane-dense hidden width (zero-padded)
    pad_n = HP - H

    factor = -math.log(10000.0) / (half - 1)
    f = np.exp(np.arange(half, dtype=np.float64) * factor).astype(np.float32)
    freqs2 = np.concatenate([f, f]).reshape(1, 2 * half)
    phase = np.concatenate([np.zeros(half, np.float32),
                            np.full(half, np.float32(np.pi / 2.0))]).reshape(1, 2 * half)

    # Zero padding keeps the padded hidden columns exactly 0 (zero weight cols,
    # zero bias, zero W2^T rows), so the math is unchanged after slicing [:H].
    w1_t = jnp.pad(jnp.transpose(params["w1"]), ((0, 0), (0, pad_n)))       # (2*half, HP)
    w2_t = jnp.pad(jnp.transpose(params["w2"]), ((0, pad_n), (0, pad_n)))   # (HP, HP)
    b1 = jnp.pad(params["b1"], (0, pad_n)).reshape(1, HP)
    b2 = jnp.pad(params["b2"], (0, pad_n)).reshape(1, HP)

    return {
        "freqs2": jnp.asarray(freqs2),            # (1, 2*half) f32
        "phase": jnp.asarray(phase),              # (1, 2*half) f32
        "w1_t": w1_t.astype(matmul_dtype),        # (2*half, HP) bf16
        "b1": b1.astype(jnp.float32),             # (1, HP)
        "w2_t": w2_t.astype(matmul_dtype),        # (HP, HP) bf16
        "b2": b2.astype(jnp.float32),             # (1, HP)
        "dim_hidden": H,
        "dim_hidden_padded": HP,
        "dim_time_emb": dim_time_emb,
    }


def time_embedding_forward(t, prepared, *, use_pallas=None):
    """t: (B,) or (B,1) float timesteps -> (B, dim_hidden) f32."""
    t2d = jnp.reshape(t, (-1, 1)).astype(jnp.float32)     # handles .squeeze()
    B = t2d.shape[0]
    H = prepared["dim_hidden"]
    HP = prepared["dim_hidden_padded"]
    two_half = prepared["freqs2"].shape[1]

    if use_pallas is None:
        use_pallas = B >= 1024
    if not use_pallas:
        # Small-batch fallback: custom-call dispatch + pipeline prologue exceeds
        # the total compute; fuse into the consumer or use plain XLA instead.
        sincos = jnp.sin(t2d * prepared["freqs2"] + prepared["phase"])
        h = jnp.maximum(
            jnp.dot(sincos.astype(prepared["w1_t"].dtype), prepared["w1_t"],
                    preferred_element_type=jnp.float32) + prepared["b1"], 0.0)
        out = jnp.dot(h.astype(prepared["w2_t"].dtype), prepared["w2_t"],
                      preferred_element_type=jnp.float32) + prepared["b2"]
        return out[:, :H]

    # Balanced batch tiling: large tiles amortize the ~0.35us per-grid-step cost,
    # cdiv-balancing avoids 46%-style padding waste, and >= 2 tiles at large B
    # lets dimension_semantics=("parallel",) shard across v7x's 2 TensorCores.
    ntiles = -(-B // _MAX_TILE_B)
    if B >= 2048:
        ntiles = max(2, ntiles)
    TILE_B = _round_up(-(-B // ntiles), 8)
    B_pad = ntiles * TILE_B
    if B_pad != B:
        t2d = jnp.pad(t2d, ((0, B_pad - B), (0, 0)))

    # VMEM budget: double-buffered t (lane-pads to 128) + out tiles plus f32/bf16
    # in-kernel temporaries; weights are KBs. Headroom for v5e's 16 MiB default
    # scoped limit while staying well under v7x's 64 MiB physical VMEM.
    est = 12 * TILE_B * _LANE * 4 + 4 * HP * HP + 8 * two_half * HP
    vmem_limit = int(min(max(est, 8 << 20), 56 << 20))

    out = pl.pallas_call(
        _time_embedding_kernel,
        out_shape=jax.ShapeDtypeStruct((B_pad, HP), jnp.float32),
        grid_spec=pltpu.PrefetchScalarGridSpec(
            num_scalar_prefetch=0,
            grid=(ntiles,),
            in_specs=[
                pl.BlockSpec((TILE_B, 1), lambda i: (i, 0)),        # t      (per-tile)
                pl.BlockSpec((1, two_half), lambda i: (0, 0)),      # freqs2 (resident)
                pl.BlockSpec((1, two_half), lambda i: (0, 0)),      # phase  (resident)
                pl.BlockSpec((two_half, HP), lambda i: (0, 0)),     # W1^T   (resident)
                pl.BlockSpec((1, HP), lambda i: (0, 0)),            # b1     (resident)
                pl.BlockSpec((HP, HP), lambda i: (0, 0)),           # W2^T   (resident)
                pl.BlockSpec((1, HP), lambda i: (0, 0)),            # b2     (resident)
            ],
            out_specs=pl.BlockSpec((TILE_B, HP), lambda i: (i, 0)),
        ),
        compiler_params=pltpu.CompilerParams(
            dimension_semantics=("parallel",),
            vmem_limit_bytes=vmem_limit),
    )(t2d, prepared["freqs2"], prepared["phase"], prepared["w1_t"],
      prepared["b1"], prepared["w2_t"], prepared["b2"])

    # TODO(synk): if the consumer is also a Pallas kernel, fuse this embedding
    # into it (or hand it the padded (B, HP) slab directly) and drop this slice.
    if B_pad != B or HP != H:
        out = out[:B, :H]
    return out


def _reference_f32(t, params, dim_time_emb):
    # pure-JAX f32 reference of the PyTorch forward, for a sanity check
    half = dim_time_emb // 2
    ts = jnp.reshape(t, (-1,)).astype(jnp.float32)
    emb = math.log(10000.0) / (half - 1)
    freqs = jnp.exp(jnp.arange(half, dtype=jnp.float32) * -emb)
    arg = ts[:, None] * freqs[None, :]
    temb = jnp.concatenate([jnp.sin(arg), jnp.cos(arg)], axis=1)
    h = jnp.maximum(temb @ params["w1"].T + params["b1"], 0.0)
    return h @ params["w2"].T + params["b2"]


if __name__ == "__main__":
    B = 8
    dim_time_emb = 32
    dim_hidden = 32

    key = jax.random.PRNGKey(0)
    kp, kt = jax.random.split(key)
    params = make_time_embedding_params(kp, dim_hidden, dim_time_emb)
    prepared = prepare_time_embedding_params(params, dim_time_emb)   # one-time prep
    t = jax.random.uniform(kt, (B, 1), jnp.float32)                  # timesteps in [0, 1)

    out = time_embedding_forward(t, prepared, use_pallas=True)       # force the Pallas path
    out = jax.block_until_ready(out)

    ref = _reference_f32(t, params, dim_time_emb)
    assert out.shape == (B, dim_hidden)
    # bf16 MXU operands (f32 accumulation) -> compare with bf16-appropriate tolerance.
    assert jnp.allclose(out, ref, atol=5e-2, rtol=5e-2), "mismatch vs f32 reference"

    print("KERNEL_OK")
</pallas_src>

<mosaic_0001>
module attributes {stable_mosaic.version = 11 : i64} {
  func.func @_time_embedding_kernel(%arg0: i32, %arg1: memref<8x1xf32, #tpu.memory_space<vmem>>, %arg2: memref<1x32xf32, #tpu.memory_space<vmem>>, %arg3: memref<1x32xf32, #tpu.memory_space<vmem>>, %arg4: memref<32x128xbf16, #tpu.memory_space<vmem>>, %arg5: memref<1x128xf32, #tpu.memory_space<vmem>>, %arg6: memref<128x128xbf16, #tpu.memory_space<vmem>>, %arg7: memref<1x128xf32, #tpu.memory_space<vmem>>, %arg8: memref<8x128xf32, #tpu.memory_space<vmem>>) attributes {dimension_semantics = [#tpu.dimension_semantics<parallel>], iteration_bounds = array<i64: 1>, scalar_prefetch = 0 : i64, scratch_operands = 0 : i64, tpu.core_type = #tpu.core_type<tc>, window_params = [{transform_indices = @transform_0, window_bounds = array<i64: 8, 1>}, {pipeline_mode = #tpu.pipeline_mode<synchronous>, transform_indices = @transform_1, window_bounds = array<i64: 1, 32>}, {pipeline_mode = #tpu.pipeline_mode<synchronous>, transform_indices = @transform_2, window_bounds = array<i64: 1, 32>}, {pipeline_mode = #tpu.pipeline_mode<synchronous>, transform_indices = @transform_3, window_bounds = array<i64: 32, 128>}, {pipeline_mode = #tpu.pipeline_mode<synchronous>, transform_indices = @transform_4, window_bounds = array<i64: 1, 128>}, {pipeline_mode = #tpu.pipeline_mode<synchronous>, transform_indices = @transform_5, window_bounds = array<i64: 128, 128>}, {pipeline_mode = #tpu.pipeline_mode<synchronous>, transform_indices = @transform_6, window_bounds = array<i64: 1, 128>}, {transform_indices = @transform_7, window_bounds = array<i64: 8, 128>}]} {
    %c0 = arith.constant 0 : index
    %c0_0 = arith.constant 0 : index
    %0 = vector.load %arg1[%c0, %c0_0] : memref<8x1xf32, #tpu.memory_space<vmem>>, vector<8x1xf32>
    %c0_1 = arith.constant 0 : index
    %c0_2 = arith.constant 0 : index
    %1 = vector.load %arg2[%c0_1, %c0_2] : memref<1x32xf32, #tpu.memory_space<vmem>>, vector<1x32xf32>
    %2 = vector.broadcast %0 : vector<8x1xf32> to vector<8x32xf32>
    %3 = vector.broadcast %1 : vector<1x32xf32> to vector<8x32xf32>
    %4 = arith.mulf %2, %3 : vector<8x32xf32>
    %c0_3 = arith.constant 0 : index
    %c0_4 = arith.constant 0 : index
    %5 = vector.load %arg3[%c0_3, %c0_4] : memref<1x32xf32, #tpu.memory_space<vmem>>, vector<1x32xf32>
    %6 = vector.broadcast %5 : vector<1x32xf32> to vector<8x32xf32>
    %7 = arith.addf %4, %6 : vector<8x32xf32>
    %8 = math.sin %7 : vector<8x32xf32>
    %9 = arith.truncf %8 : vector<8x32xf32> to vector<8x32xbf16>
    %c0_5 = arith.constant 0 : index
    %c0_6 = arith.constant 0 : index
    %10 = vector.load %arg4[%c0_5, %c0_6] : memref<32x128xbf16, #tpu.memory_space<vmem>>, vector<32x128xbf16>
    %cst = arith.constant dense<0.000000e+00> : vector<8x128xf32>
    %11 = tpu.matmul %9, %10, %cst {dimension_numbers = #tpu.dot_dimension_numbers<[1], [0], [0], [1], [0, 0, 1, 1], [], []>} : vector<8x32xbf16>, vector<32x128xbf16>, vector<8x128xf32> -> vector<8x128xf32>
    %c0_7 = arith.constant 0 : index
    %c0_8 = arith.constant 0 : index
    %12 = vector.load %arg5[%c0_7, %c0_8] : memref<1x128xf32, #tpu.memory_space<vmem>>, vector<1x128xf32>
    %13 = vector.broadcast %12 : vector<1x128xf32> to vector<8x128xf32>
    %14 = arith.addf %11, %13 : vector<8x128xf32>
    %cst_9 = arith.constant 0.000000e+00 : f32
    %15 = vector.broadcast %cst_9 : f32 to vector<8x128xf32>
    %16 = arith.maximumf %14, %15 : vector<8x128xf32>
    %17 = arith.truncf %16 : vector<8x128xf32> to vector<8x128xbf16>
    %c0_10 = arith.constant 0 : index
    %c0_11 = arith.constant 0 : index
    %18 = vector.load %arg6[%c0_10, %c0_11] : memref<128x128xbf16, #tpu.memory_space<vmem>>, vector<128x128xbf16>
    %cst_12 = arith.constant dense<0.000000e+00> : vector<8x128xf32>
    %19 = tpu.matmul %17, %18, %cst_12 {dimension_numbers = #tpu.dot_dimension_numbers<[1], [0], [0], [1], [0, 0, 1, 1], [], []>} : vector<8x128xbf16>, vector<128x128xbf16>, vector<8x128xf32> -> vector<8x128xf32>
    %c0_13 = arith.constant 0 : index
    %c0_14 = arith.constant 0 : index
    %20 = vector.load %arg7[%c0_13, %c0_14] : memref<1x128xf32, #tpu.memory_space<vmem>>, vector<1x128xf32>
    %21 = vector.broadcast %20 : vector<1x128xf32> to vector<8x128xf32>
    %22 = arith.addf %19, %21 : vector<8x128xf32>
    %c0_15 = arith.constant 0 : index
    %c0_16 = arith.constant 0 : index
    %23 = vector.load %arg8[%c0_15, %c0_16] : memref<8x128xf32, #tpu.memory_space<vmem>>, vector<8x128xf32>
    tpu.vector_store %arg8[%c0_15, %c0_16], %22 {strides = array<i32>} : memref<8x128xf32, #tpu.memory_space<vmem>>, vector<8x128xf32>,
    return
  }
  func.func @transform_0(%arg0: i32) -> (i32, i32) {
    %c0_i32 = arith.constant 0 : i32
    %c0_i32_0 = arith.constant 0 : i32
    return %arg0, %c0_i32 : i32, i32
  }
  func.func @transform_1(%arg0: i32) -> (i32, i32) {
    %c0_i32 = arith.constant 0 : i32
    %c0_i32_0 = arith.constant 0 : i32
    %c0_i32_1 = arith.constant 0 : i32
    return %c0_i32, %c0_i32_0 : i32, i32
  }
  func.func @transform_2(%arg0: i32) -> (i32, i32) {
    %c0_i32 = arith.constant 0 : i32
    %c0_i32_0 = arith.constant 0 : i32
    %c0_i32_1 = arith.constant 0 : i32
    return %c0_i32, %c0_i32_0 : i32, i32
  }
  func.func @transform_3(%arg0: i32) -> (i32, i32) {
    %c0_i32 = arith.constant 0 : i32
    %c0_i32_0 = arith.constant 0 : i32
    %c0_i32_1 = arith.constant 0 : i32
    return %c0_i32, %c0_i32_0 : i32, i32
  }
  func.func @transform_4(%arg0: i32) -> (i32, i32) {
    %c0_i32 = arith.constant 0 : i32
    %c0_i32_0 = arith.constant 0 : i32
    %c0_i32_1 = arith.constant 0 : i32
    return %c0_i32, %c0_i32_0 : i32, i32
  }
  func.func @transform_5(%arg0: i32) -> (i32, i32) {
    %c0_i32 = arith.constant 0 : i32
    %c0_i32_0 = arith.constant 0 : i32
    %c0_i32_1 = arith.constant 0 : i32
    return %c0_i32, %c0_i32_0 : i32, i32
  }
  func.func @transform_6(%arg0: i32) -> (i32, i32) {
    %c0_i32 = arith.constant 0 : i32
    %c0_i32_0 = arith.constant 0 : i32
    %c0_i32_1 = arith.constant 0 : i32
    return %c0_i32, %c0_i32_0 : i32, i32
  }
  func.func @transform_7(%arg0: i32) -> (i32, i32) {
    %c0_i32 = arith.constant 0 : i32
    %c0_i32_0 = arith.constant 0 : i32
    return %arg0, %c0_i32 : i32, i32
  }
}

</mosaic_0001>

<bundles_post_ra>
// kernel: tpu_custom_call.1
= control target key start
LH: loop header
LB: loop body
LE: loop exit
PB: predicated region body
PF: predicated region fallthrough
CT: control target
= control target key end

     0   :  { %12 = vsyncpa [#allocation3], 0  ;;  %s649_s0 = inlined_call_operand.vmem [shape: f32[8,1], index: 0, kind: input, shape index: {}]   ;;  %s650_s1 = inlined_call_operand.vmem [shape: f32[1,32], index: 1, kind: input, shape index: {}]   ;;  %s651_s2 = inlined_call_operand.vmem [shape: f32[1,32], index: 2, kind: input, shape index: {}]   ;;  %s652_s3 = inlined_call_operand.hbm [shape: bf16[32,128], index: 3, kind: input, shape index: {}]   ;;  %s653_s4 = inlined_call_operand.vmem [shape: f32[1,128], index: 4, kind: input, shape index: {}]   ;;  %s654_s5 = inlined_call_operand.hbm [shape: bf16[128,128], index: 5, kind: input, shape index: {}]   ;;  %s655_s6 = inlined_call_operand.vmem [shape: f32[1,128], index: 6, kind: input, shape index: {}]   ;;  %s656_s7 = inlined_call_operand.hbm [shape: f32[8,128], index: 7, kind: output, shape index: {}]  }
   0x1   :  { %13 = vsyncpa [#allocation6], 0 }
   0x2   :  { %14 = vsyncpa [#allocation4], 0  ;;  %s538_s24 = smov [#allocation2]  }
   0x3   :  { %s26_s25 = sshll.u32 %s538_s24, 4  ;;  %s27_s25 = int_to_ptr.vmem [resolvable:$true] %s26_s25 }
   0x4   :  { %s480_s26 = scalar_lea.vmem %s27_s25, 256  ;;  %p485_p1 = scmp.lt.s32.totalorder %s27_s25, %s27_s25 }
   0x5   :  { %p481_p0 = scmp.ne.s32.totalorder %s27_s25, %s480_s26  ;;  %p486_p2 = scmp.lt.s32.totalorder %s480_s26, %s480_s26 }
   0x7   :  { %p487_p3 = por %p486_p2, %p485_p1 }
   0x9   :  { %p488_p4 = pnand %p487_p3, %p481_p0 }
   0xb   :  { %491 = shalt.err (!%p488_p4)
}
   0xc   :  { %s539_s27 = smov 64   ;;  %s540_s28 = smov 4  }
   0xd   :  { %32 = dma.hbm_to_vmem [thread:$0]  %s652_s3, 256, %s27_s25, [#allocation3], %s539_s27, %s539_s27, %s540_s28  }
   0xe   :  { %s541_s8 = smov [#allocation5]  }
   0xf   :  { %s40_s9 = sshll.u32 %s541_s8, 4  ;;  %s41_s9 = int_to_ptr.vmem [resolvable:$true] %s40_s9 }
  0x10   :  { %s500_s10 = scalar_lea.vmem %s41_s9, 1024  ;;  %p505_p6 = scmp.lt.s32.totalorder %s41_s9, %s41_s9 }
  0x11   :  { %p501_p5 = scmp.ne.s32.totalorder %s41_s9, %s500_s10  ;;  %p506_p7 = scmp.lt.s32.totalorder %s500_s10, %s500_s10 }
  0x13   :  { %p507_p8 = por %p506_p7, %p505_p6 }
  0x15   :  { %p508_p9 = pnand %p507_p8, %p501_p5 }
  0x17   :  { %511 = shalt.err (!%p508_p9)
}
  0x18   :  { %46 = dma.hbm_to_vmem [thread:$0]  %s654_s5, 1024, %s41_s9, [#allocation6], %s539_s27, %s539_s27, %s540_s28  }
  0x19   :  { %532 = dma.done.wait [#allocation3], 256  }
  0x1a   :  { %533 = vsyncadd [#allocation3], 4294967040 }
  0x1b   :  { %534 = dma.done.wait [#allocation6], 1024  }
  0x1c   :  { %535 = vsyncadd [#allocation6], 4294966272  ;;  %v542_v0 = vmov 0   ;;  %v56_v1 = vld [vmem:[%s649_s0] sm:$0xff]  ;;  %v458_v2 = vld [vmem:[#allocation2 + $0x8] sm:$0xff]   ;;  %v543_v3 = vmov 0.0  }
  0x1d   :  { %457 = vset.pattern.permute.xlu0 %v542_v0  ;;  %411 = vmatprep.subr.bf16.mxu0 %v543_v3  ;;  %vm544_vm0 = vmmov 0   ;;  %v459_v4 = vld [vmem:[#allocation2] sm:$0xff]   ;;  %v460_v5 = vld [vmem:[#allocation5 + $0x38] sm:$0xff]   ;;  %v462_v7 = vld [vmem:[#allocation5 + $0x28] sm:$0xff]   ;;  %v545_v26 = vmov 683565275  }
  0x1e   :  { %60 = vperm.xlu0 %457, %v56_v1   ;;  %415 = vmatprep.mubr.msk.bf16.mxu0 %vm544_vm0, %v543_v3  ;;  %v461_v6 = vld [vmem:[#allocation5 + $0x30] sm:$0xff]   ;;  %v463_v8 = vld [vmem:[#allocation5 + $0x20] sm:$0xff]   ;;  %v464_v9 = vld [vmem:[#allocation5 + $0x18] sm:$0xff]   ;;  %v546_v28 = vmov 2475754826   ;;  %vm206_vm14 = vcmask 261120  }
  0x1f   :  { %412 = vmatpush3.bf16.msra.mxu0 %v458_v2  ;;  %419 = vmatprep.subr.bf16.mxu1 %v543_v3  ;;  %v465_v10 = vld [vmem:[#allocation5 + $0x10] sm:$0xff]   ;;  %v547_v31 = vmov 2131351028   ;;  %v548_v34 = vmov 2102212464   ;;  %s551_s18 = smov [#allocation7]  }
  0x20   :  { %413 = vmatprep.subr.bf16.mxu0 %v543_v3  ;;  %435 = vmatprep.mubr.msk.bf16.mxu1 %vm544_vm0, %v543_v3  ;;  %v380_v11 = vld [vmem:[%s650_s1] ss:$0 sm:$0xff]  ;;  %v549_v37 = vmov 920167782   ;;  %v550_v40 = vmov 1326507024  }
  0x21   :  { %420 = vmatpush3.bf16.msra.mxu1 %v460_v5  ;;  %v381_v12 = vld [vmem:[%s651_s2] ss:$0 sm:$0xff]  ;;  %s370_s19 = sshll.u32 %s551_s18, 4  ;;  %s371_s19 = int_to_ptr.vmem [resolvable:$true] %s370_s19 }
  0x22   :  { %421 = vmatprep.subr.bf16.mxu1 %v543_v3  ;;  %p517_p11 = scmp.lt.s32.totalorder %s371_s19, %s371_s19 }
  0x23   :  { %414 = vmatpush3.bf16.msra.mxu0 %v459_v4 }
  0x25   :  { %422 = vmatpush3.bf16.msra.mxu1 %v461_v6 }
  0x26   :  { %423 = vmatprep.subr.bf16.mxu1 %v543_v3 }
  0x29   :  { %424 = vmatpush3.bf16.msra.mxu1 %v462_v7 }
  0x2a   :  { %425 = vmatprep.subr.bf16.mxu1 %v543_v3 }
  0x2d   :  { %426 = vmatpush3.bf16.msra.mxu1 %v463_v8 }
  0x2e   :  { %427 = vmatprep.subr.bf16.mxu1 %v543_v3 }
  0x31   :  { %428 = vmatpush3.bf16.msra.mxu1 %v464_v9 }
  0x32   :  { %429 = vmatprep.subr.bf16.mxu1 %v543_v3 }
  0x35   :  { %430 = vmatpush3.bf16.msra.mxu1 %v465_v10 }
  0x36   :  { %431 = vmatprep.subr.bf16.mxu1 %v543_v3 }
  0x99   :  { %v61_v13 = vpop.permute.xlu0 %60 }
  0x9a   :  { %v69_v14 = vmul.f32 %v380_v11, %v61_v13 }
  0x9c   :  { %v618_v15 = vadd.f32 %v381_v12, %v69_v14 }
  0x9e   :  { %v81_v16 = vand.u32 2139095040, %v618_v15  ;;  %v78_v20 = vand.u32 2147483647, %v618_v15  ;;  %vm80_vm8 = vcmp.lt.s32.totalorder %v618_v15, 0  ;;  %vm170_vm13 = vweird.f32 %v618_v15 }
  0xa0   :  { %v82_v17 = vshrl.u32 %v81_v16, 23  ;;  %v85_v23 = vand.u32 8388607, %v78_v20  ;;  %vm79_vm9 = vcmp.le.f32.partialorder %v78_v20, 0.7853982 }
  0xa2   :  { %v382_v18 = vadd.s32 4294967169, %v82_v17  ;;  %v86_v42 = vor.u32 8388608, %v85_v23 }
  0xa4   :  { %v88_v19 = vadd.s32 1, %v382_v18  ;;  %v126_v56 = vshll.u32 %v86_v42, 8 }
  0xa6   :  { %vm89_vm1 = vcmp.gt.s32.totalorder %v88_v19, 0 }
  0xa7   :  { %v90_v21 = vsel %vm89_vm1, %v88_v19, 0 }
  0xa8   :  { %v92_v22 = vand.u32 31, %v90_v21  ;;  %v91_v25 = vshrl.u32 %v90_v21, 5 }
  0xaa   :  { %v93_v24 = vsub.s32 32, %v92_v22  ;;  %v95_v27 = vshll.u32 %v545_v26, %v92_v22  ;;  %v98_v29 = vshll.u32 %v546_v28, %v92_v22  ;;  %v101_v33 = vshll.u32 %v547_v31, %v92_v22 }
  0xab   :  { %v104_v36 = vshll.u32 %v548_v34, %v92_v22  ;;  %v107_v39 = vshll.u32 %v549_v37, %v92_v22  ;;  %vm110_vm2 = vcmp.lt.s32.totalorder %v91_v25, 1  ;;  %vm113_vm3 = vcmp.lt.s32.totalorder %v91_v25, 4 }
  0xac   :  { %v96_v30 = vshrl.u32 %v546_v28, %v93_v24  ;;  %v99_v32 = vshrl.u32 %v547_v31, %v93_v24  ;;  %v102_v35 = vshrl.u32 %v548_v34, %v93_v24  ;;  %v105_v38 = vshrl.u32 %v549_v37, %v93_v24 }
  0xad   :  { %v108_v41 = vshrl.u32 %v550_v40, %v93_v24  ;;  %v94_v51 = vshrl.u32 %v545_v26, %v93_v24  ;;  %vm112_vm4 = vcmp.lt.s32.totalorder %v91_v25, 3  ;;  %vm111_vm5 = vcmp.lt.s32.totalorder %v91_v25, 2 }
  0xae   :  { %v97_v43 = vor.u32 %v96_v30, %v95_v27  ;;  %v100_v44 = vor.u32 %v99_v32, %v98_v29  ;;  %v103_v45 = vor.u32 %v102_v35, %v101_v33  ;;  %v106_v46 = vor.u32 %v105_v38, %v104_v36 }
  0xaf   :  { %v109_v47 = vor.u32 %v108_v41, %v107_v39 }
  0xb0   :  { %v115_v48 = vsel %vm113_vm3, %v103_v45, 2102212464  ;;  %v118_v49 = vsel %vm110_vm2, %v97_v43, %v100_v44  ;;  %v122_v50 = vsel %vm110_vm2, %v100_v44, %v103_v45  ;;  %v119_v52 = vsel %vm113_vm3, %v106_v46, 920167782 }
  0xb1   :  { %v123_v53 = vsel %vm113_vm3, %v109_v47, 1326507024  ;;  %v120_v54 = vsel %vm112_vm4, %v103_v45, %v119_v52  ;;  %v114_v57 = vsel %vm110_vm2, %v94_v51, %v97_v43  ;;  %v116_v58 = vsel %vm112_vm4, %v100_v44, %v115_v48  ;;  %v467_v47 = vld [vmem:[#allocation5] sm:$0xff]   ;;  %v386_v48 = vld [vmem:[%s653_s4] ss:$0 sm:$0xff]  ;;  %s512_s4 = scalar_lea.vmem %s371_s19, 128 }
  0xb2   :  { %v124_v55 = vsel %vm112_vm4, %v106_v46, %v123_v53  ;;  %v121_v59 = vsel %vm111_vm5, %v118_v49, %v120_v54  ;;  %v117_v1 = vsel %vm111_vm5, %v114_v57, %v116_v58  ;;  %v466_v46 = vld [vmem:[#allocation5 + $0x8] sm:$0xff]   ;;  %p513_p10 = scmp.ne.s32.totalorder %s371_s19, %s512_s4  ;;  %p518_p12 = scmp.lt.s32.totalorder %s512_s4, %s512_s4 }
  0xb3   :  { %v125_v60 = vsel %vm111_vm5, %v122_v50, %v124_v55  ;;  %v627_v63 = vmul.u32.u64.low %v126_v56, %v121_v59  ;;  %v628_v0 = vmul.u32.u64.high %v126_v56, %v121_v59, %v627_v63  ;;  %v133_v4 = vmul.u32 %v126_v56, %v117_v1  ;;  %432 = vmatpush3.bf16.msra.mxu1 %v466_v46  ;;  %v390_v55 = vld [vmem:[%s655_s6] ss:$0 sm:$0xff] }
  0xb4   :  { %v624_v61 = vmul.u32.u64.low %v126_v56, %v125_v60  ;;  %v625_v62 = vmul.u32.u64.high %v126_v56, %v125_v60, %v624_v61  ;;  %433 = vmatprep.subr.bf16.mxu1 %v543_v3  ;;  %p519_p13 = por %p518_p12, %p517_p11 }
  0xb5   :  { %v136_v2 = vadd.s32 1, %v628_v0 }
  0xb6   :  { %vm135_vm6 = vc.u32 %v625_v62, %v627_v63  ;;  %v134_v17 = vadd.s32 %v627_v63, %v625_v62  ;;  %p520_p0 = pnand %p519_p13, %p513_p10 }
  0xb7   :  { %v137_v5 = vsel %vm135_vm6, %v136_v2, %v628_v0  ;;  %434 = vmatpush3.bf16.msra.mxu1 %v467_v47 }
  0xb8   :  { %v138_v6 = vadd.s32 %v137_v5, %v133_v4 }
  0xba   :  { %v139_v7 = vadd.s32 536870912, %v138_v6 }
  0xbc   :  { %v140_v8 = vshrl.u32 %v139_v7, 30 }
  0xbe   :  { %v141_v9 = vshll.u32 %v140_v8, 30  ;;  %v164_v31 = vsub.s32 4, %v140_v8 }
  0xc0   :  { %v142_v10 = vsub.s32 %v138_v6, %v141_v9  ;;  %v165_v34 = vsel %vm80_vm8, %v164_v31, %v140_v8 }
  0xc1   :  { %v167_v35 = vsel %vm79_vm9, 0, %v165_v34 }
  0xc2   :  { %v144_v11 = vsub.s32 0, %v142_v10  ;;  %v171_v36 = vadd.s32 3, %v167_v35 }
  0xc4   :  { %v383_v12 = vmin.u32 %v144_v11, %v142_v10  ;;  %v172_v37 = vand.u32 3, %v171_v36 }
  0xc6   :  { %v146_v13 = vclz %v383_v12  ;;  %vm177_vm10 = vcmp.eq.s32.totalorder %v172_v37, 2  ;;  %vm174_vm11 = vcmp.eq.s32.totalorder %v172_v37, 0  ;;  %vm173_vm12 = vcmp.lt.s32.totalorder %v172_v37, 2 }
  0xc8   :  { %v384_v14 = vadd.s32 4294967294, %v146_v13 }
  0xca   :  { %vm385_vm7 = vcmp.lt.s32.totalorder %v384_v14, 0 }
  0xcb   :  { %v149_v16 = vsel %vm385_vm7, 0, %v384_v14 }
  0xcc   :  { %v150_v18 = vsub.s32 32, %v149_v16  ;;  %v154_v19 = vsub.s32 4294967266, %v149_v16  ;;  %v151_v21 = vshll.u32 %v142_v10, %v149_v16 }
  0xce   :  { %v152_v22 = vshrl.u32 %v134_v17, %v150_v18  ;;  %v155_v23 = vadd.s32 127, %v154_v19 }
  0xd0   :  { %v153_v24 = vor.u32 %v152_v22, %v151_v21  ;;  %v156_v25 = vshll.u32 %v155_v23, 23 }
  0xd2   :  { %v157_v26 = vor.u32 4788187, %v156_v25  ;;  %v160_v28 = vcvt.s32.f32 %v153_v24 }
  0xd4   :  { %v158_v27 = vand.u32 2147483647, %v157_v26 }
  0xd6   :  { %v161_v29 = vmul.f32 %v160_v28, %v158_v27 }
  0xd8   :  { %v162_v30 = vxor.u32 2147483648, %v161_v29 }
  0xda   :  { %v163_v32 = vsel %vm80_vm8, %v162_v30, %v161_v29 }
  0xdb   :  { %v166_v33 = vsel %vm79_vm9, %v618_v15, %v163_v32 }
  0xdc   :  { %468 = vcosq.f32 %v166_v33 }
  0xdd   :  { %470 = vsinq.f32 %v166_v33 }
  0xe9   :  { %v469_v38 = vpop.eup %468 }
  0xea   :  { %v471_v39 = vpop.eup %470  ;;  %v178_v40 = vxor.u32 2147483648, %v469_v38 }
  0xeb   :  { %v175_v41 = vxor.u32 2147483648, %v471_v39 }
  0xec   :  { %v179_v42 = vsel %vm177_vm10, %v178_v40, %v471_v39 }
  0xed   :  { %v176_v43 = vsel %vm174_vm11, %v469_v38, %v175_v41 }
  0xee   :  { %v180_v20 = vsel %vm173_vm12, %v176_v43, %v179_v42 }
  0xef   :  { %v181_v44 = vsel %vm170_vm13, nan, %v180_v20 }
  0xf0   :  { %v182_v45 = vpack.c.bf16 %v181_v44, %v181_v44 }
  0xf2   :  { %416 = vmatmul.mubr.msk.bf16.vlgmr.msra.gmra.mxu0 %vm206_vm14, %v182_v45 }
 0x1b2   :  { %v244_v49 = vpop.f32.mrf.mxu0 }
 0x1b3   :  { %v245_v50 = vadd.f32 %v386_v48, %v244_v49 }
 0x1b4   :  { %v417_v51 = vpop.f32.mrf.mxu0 }
 0x1b5   :  { %v250_v52 = vmax.f32 %v245_v50, 0.0 }
 0x1b6   :  { %v247_v15 = vpop.f32.mrf.mxu0 }
 0x1b7   :  { %v251_v53 = vpack.c.bf16 %v250_v52, %v250_v52 }
 0x1b8   :  { %v418_v54 = vpop.f32.mrf.mxu0 }
 0x1b9   :  { %436 = vmatmul.mubr.bf16.vlgmr.msra.gmra.mxu1 %v251_v53 }
 0x279   :  { %v357_v3 = vpop.f32.mrf.mxu1 }
 0x27a   :  { %v358_v56 = vadd.f32 %v390_v55, %v357_v3 }
 0x27b   :  { %v437_v57 = vpop.f32.mrf.mxu1 }
 0x27c   :  { %363 = vst [vmem:[#allocation7] sm:$0xff] %v358_v56 }
 0x27d   :  { %v360_v58 = vpop.f32.mrf.mxu1 }
 0x27e   :  { %523 = shalt.err (!%p520_p0)
}
 0x27f   :  { %373 = dma.vmem_to_hbm [thread:$0]  %s371_s19, 128, %s656_s7, [#allocation4]   ;;  %v438_v59 = vpop.f32.mrf.mxu1 }
 0x280   :  { %536 = dma.done.wait [#allocation4], 128  }
 0x281   :  { %537 = vsyncadd [#allocation4], 4294967168 }
 0x282   :  { %377 = vsyncpa [#allocation3], 1 }
 0x283   :  { %378 = vsyncpa [#allocation6], 1 }
 0x284   :  { %379 = vsyncpa [#allocation4], 1 }

</bundles_post_ra>
